<compile_context>
chip_gen: v6e
topology: v6e:2x2x1
jax: 0.10.0
libtpu: 0.0.40
codegen_flags: <defaults>
</compile_context>

<pallas_src>
import jax
import jax.numpy as jnp
from jax import lax
from jax.experimental import pallas as pl
from jax.experimental.pallas import tpu as pltpu


def _dense_arch_kernel(x_ref, w_ref, b_ref, o_ref):
    # x: [bB, F]; w: [O, F] (PyTorch nn.Linear layout); b: [O, 1]; o: [O, bB]
    # MXU matmul with f32 accumulation: contract F of w against F of x
    # (i.e. W @ x^T), giving a lane-dense [O, bB] tile.  Bias broadcasts over
    # the batch lanes on the VPU; single final cast to the output dtype.
    acc = lax.dot_general(
        w_ref[...],
        x_ref[...],
        dimension_numbers=(((1,), (1,)), ((), ())),
        preferred_element_type=jnp.float32,
    )
    o_ref[...] = (acc + b_ref[...]).astype(o_ref.dtype)


def test_dense_arch_forward(
    dense_input,
    weight,
    bias,
    *,
    block_b=8192,
    output_layout="bo",
    compute_dtype=None,
):
    """TestDenseArch.forward: y = dense_input @ weight.T + bias.

    dense_input: [B, F]; weight: [O, F] (PyTorch layout); bias: [O].

    output_layout:
      "bo" (default) -> [B, O], matching the PyTorch module exactly.
      "ob"           -> lane-dense [O, B] slab (preferred hand-off at scale).
    compute_dtype: optionally cast x/weight (e.g. jnp.bfloat16) before the
      matmul; accumulation stays f32 and the output keeps dense_input's dtype.
    """
    B, F = dense_input.shape
    O = weight.shape[0]
    out_dtype = dense_input.dtype

    x = dense_input
    w = weight
    if compute_dtype is not None:
        x = x.astype(compute_dtype)
        w = w.astype(compute_dtype)
    b_col = bias.astype(jnp.float32).reshape(O, 1)  # broadcasts over batch lanes

    cost = pl.CostEstimate(
        flops=2 * B * F * O,
        transcendentals=0,
        bytes_accessed=(x.dtype.itemsize * B * F
                        + w.dtype.itemsize * F * O
                        + 4 * O
                        + out_dtype.itemsize * B * O),
    )
    out_shape = jax.ShapeDtypeStruct((O, B), out_dtype)  # lane-dense [O, B]

    if B <= block_b:
        # Small/medium batch: single invocation, NO grid -> no grid/pipeline
        # scaffolding.  All operands are full-array VMEM blocks (full-array
        # blocks are exempt from the (8,128) divisibility rule).
        vmem = pl.BlockSpec(memory_space=pltpu.MemorySpace.VMEM)
        out_ob = pl.pallas_call(
            _dense_arch_kernel,
            out_shape=out_shape,
            in_specs=[vmem, vmem, vmem],
            out_specs=pl.BlockSpec(memory_space=pltpu.MemorySpace.VMEM),
            cost_estimate=cost,
        )(x, w, b_col)
    else:
        # Large batch: stream x in block_b-row tiles and write lane-dense
        # [O, block_b] output tiles over a batch grid axis; weight & bias use
        # constant index maps so they are DMA'd once and stay VMEM-resident.
        # VMEM @ block_b=8192 (f32): x 2*4 MiB + out 2*256 KiB ~= 8.6 MiB,
        # within the default scoped limit on v5e/v6e/v7x.
        grid = (pl.cdiv(B, block_b),)
        out_ob = pl.pallas_call(
            _dense_arch_kernel,
            out_shape=out_shape,
            grid=grid,
            in_specs=[
                pl.BlockSpec((block_b, F), lambda i: (i, 0)),  # streamed x tiles
                pl.BlockSpec((O, F), lambda i: (0, 0)),        # resident weight
                pl.BlockSpec((O, 1), lambda i: (0, 0)),        # resident bias
            ],
            out_specs=pl.BlockSpec((O, block_b), lambda i: (0, i)),  # lane-dense
            compiler_params=pltpu.CompilerParams(
                dimension_semantics=("parallel",)
            ),
            cost_estimate=cost,
        )(x, w, b_col)

    if output_layout == "ob":
        return out_ob
    return out_ob.T  # module-faithful [B, O]


if __name__ == "__main__":
    num_float_features = 10   # in_features of nn.Linear
    out_features = 8

    key = jax.random.PRNGKey(0)
    k_x, k_w, k_b, k_x2, k_x3 = jax.random.split(key, 5)

    # Deterministic parameter init mirroring nn.Linear's default
    # U(-1/sqrt(in_features), 1/sqrt(in_features)).
    bound = 1.0 / (num_float_features ** 0.5)
    weight = jax.random.uniform(
        k_w, (out_features, num_float_features), jnp.float32, -bound, bound)
    bias = jax.random.uniform(
        k_b, (out_features,), jnp.float32, -bound, bound)

    # --- Small batch: grid-free path (module-faithful [B, O] output) ---
    batch = 16
    dense_input = jax.random.normal(
        k_x, (batch, num_float_features), jnp.float32)
    out = jax.block_until_ready(
        test_dense_arch_forward(dense_input, weight, bias))
    ref = dense_input @ weight.T + bias
    assert out.shape == (batch, out_features)
    assert jnp.allclose(out, ref, atol=1e-5, rtol=1e-5)

    # --- Tiled path (block_b overridden small ONLY to exercise the grid at
    #     demo scale; production default is block_b=8192), lane-dense output ---
    batch_big = 1024
    dense_input_big = jax.random.normal(
        k_x2, (batch_big, num_float_features), jnp.float32)
    out_big_ob = jax.block_until_ready(
        test_dense_arch_forward(
            dense_input_big, weight, bias, block_b=256, output_layout="ob"))
    ref_big = dense_input_big @ weight.T + bias
    assert out_big_ob.shape == (out_features, batch_big)
    assert jnp.allclose(out_big_ob.T, ref_big, atol=1e-5, rtol=1e-5)

    # --- Tiled path with a partial last tile (B % block_b != 0): verifies the
    #     lane-masked remainder stores of the lane-dense layout ---
    batch_rag = 1000
    dense_input_rag = jax.random.normal(
        k_x3, (batch_rag, num_float_features), jnp.float32)
    out_rag = jax.block_until_ready(
        test_dense_arch_forward(dense_input_rag, weight, bias, block_b=256))
    ref_rag = dense_input_rag @ weight.T + bias
    assert out_rag.shape == (batch_rag, out_features)
    assert jnp.allclose(out_rag, ref_rag, atol=1e-5, rtol=1e-5)

    print("KERNEL_OK")
</pallas_src>

<mosaic_0001>
module attributes {stable_mosaic.version = 11 : i64} {
  func.func @_dense_arch_kernel(%arg0: memref<16x10xf32, #tpu.memory_space<vmem>>, %arg1: memref<8x10xf32, #tpu.memory_space<vmem>>, %arg2: memref<8x1xf32, #tpu.memory_space<vmem>>, %arg3: memref<8x16xf32, #tpu.memory_space<vmem>>) attributes {dimension_semantics = [], scalar_prefetch = 0 : i64, scratch_operands = 0 : i64, tpu.core_type = #tpu.core_type<tc>} {
    %c0 = arith.constant 0 : index
    %c0_0 = arith.constant 0 : index
    %0 = vector.load %arg1[%c0, %c0_0] : memref<8x10xf32, #tpu.memory_space<vmem>>, vector<8x10xf32>
    %c0_1 = arith.constant 0 : index
    %c0_2 = arith.constant 0 : index
    %1 = vector.load %arg0[%c0_1, %c0_2] : memref<16x10xf32, #tpu.memory_space<vmem>>, vector<16x10xf32>
    %cst = arith.constant dense<0.000000e+00> : vector<8x16xf32>
    %2 = tpu.matmul %0, %1, %cst {dimension_numbers = #tpu.dot_dimension_numbers<[1], [1], [0], [0], [0, 0, 1, 0], [], []>} : vector<8x10xf32>, vector<16x10xf32>, vector<8x16xf32> -> vector<8x16xf32>
    %c0_3 = arith.constant 0 : index
    %c0_4 = arith.constant 0 : index
    %3 = vector.load %arg2[%c0_3, %c0_4] : memref<8x1xf32, #tpu.memory_space<vmem>>, vector<8x1xf32>
    %4 = vector.broadcast %3 : vector<8x1xf32> to vector<8x16xf32>
    %5 = arith.addf %2, %4 : vector<8x16xf32>
    %c0_5 = arith.constant 0 : index
    %c0_6 = arith.constant 0 : index
    %6 = vector.load %arg3[%c0_5, %c0_6] : memref<8x16xf32, #tpu.memory_space<vmem>>, vector<8x16xf32>
    tpu.vector_store %arg3[%c0_5, %c0_6], %5 {strides = array<i32>} : memref<8x16xf32, #tpu.memory_space<vmem>>, vector<8x16xf32>,
    return
  }
}

</mosaic_0001>

<bundles_post_ra>
// kernel: tpu_custom_call.1
= control target key start
LH: loop header
LB: loop body
LE: loop exit
PB: predicated region body
PF: predicated region fallthrough
CT: control target
= control target key end

     0   :  { %8 = vsyncpa [#allocation3], 0  ;;  %s239_s0 = inlined_call_operand.hbm [shape: f32[16,10], index: 0, kind: input, shape index: {}]   ;;  %s240_s1 = inlined_call_operand.vmem [shape: f32[8,10], index: 1, kind: input, shape index: {}]   ;;  %s241_s2 = inlined_call_operand.vmem [shape: f32[8,1], index: 2, kind: input, shape index: {}]   ;;  %s242_s3 = inlined_call_operand.hbm [shape: f32[8,16], index: 3, kind: output, shape index: {}]  }
   0x1   :  { %9 = vsyncpa [#allocation4], 0  ;;  %s200_s12 = smov [#allocation2]  }
   0x2   :  { %s15_s13 = sshll.u32 %s200_s12, 4  ;;  %s16_s13 = int_to_ptr.vmem [resolvable:$true] %s15_s13 }
   0x3   :  { %s164_s14 = scalar_lea.vmem %s16_s13, 256  ;;  %p169_p1 = scmp.lt.s32.totalorder %s16_s13, %s16_s13 }
   0x4   :  { %p165_p0 = scmp.ne.s32.totalorder %s16_s13, %s164_s14  ;;  %p170_p2 = scmp.lt.s32.totalorder %s164_s14, %s164_s14 }
   0x6   :  { %p171_p3 = por %p170_p2, %p169_p1 }
   0x8   :  { %p172_p4 = pnand %p171_p3, %p165_p0 }
   0xa   :  { %175 = shalt.err (!%p172_p4)
}
   0xb   :  { %s201_s15 = smov 128   ;;  %s202_s16 = smov 8  }
   0xc   :  { %21 = dma.hbm_to_vmem [thread:$0]  %s239_s0, 256, %s16_s13, [#allocation3], %s201_s15, %s201_s15, %s202_s16  }
   0xd   :  { %196 = dma.done.wait [#allocation3], 256  }
   0xe   :  { %197 = vsyncadd [#allocation3], 4294967040  ;;  %v203_v0 = vmov 0.0   ;;  %vm204_vm0 = vmmov 0   ;;  %v205_v1 = vmov 0   ;;  %vm38_vm1 = vcmask 80896  }
   0xf   :  { %141 = vmatprep.subr.mxu0 %v203_v0  ;;  %145 = vmatprep.mubr.msk.f32.mxu0 %vm204_vm0, %v203_v0  ;;  %v31_v2 = vld [vmem:[#allocation2 + $0x8] sm:$0xff]  ;;  %v32_v3 = vld [vmem:[%s241_s2] sm:$0xff]  ;;  %s206_s22 = smov [#allocation5]   ;;  %vm118_vm2 = vcmask 130048  }
  0x10   :  { %155 = vset.pattern.permute.xlu0 %v205_v1  ;;  %142 = vmatpush3.xpose.msk.msra.mxu0 %vm38_vm1, %v31_v2  ;;  %v30_v4 = vld [vmem:[#allocation2] sm:$0xff]  ;;  %s126_s23 = sshll.u32 %s206_s22, 4  ;;  %s127_s23 = int_to_ptr.vmem [resolvable:$true] %s126_s23 }
  0x11   :  { %143 = vmatprep.subr.mxu0 %v203_v0  ;;  %35 = vperm.xlu0 %155, %v32_v3   ;;  %v29_v5 = vld [vmem:[%s240_s1] sm:$0xff]  ;;  %s176_s24 = scalar_lea.vmem %s127_s23, 128  ;;  %p181_p6 = scmp.lt.s32.totalorder %s127_s23, %s127_s23 }
  0x12   :  { %p177_p5 = scmp.ne.s32.totalorder %s127_s23, %s176_s24  ;;  %p182_p7 = scmp.lt.s32.totalorder %s176_s24, %s176_s24 }
  0x14   :  { %144 = vmatpush3.xpose.msk.msra.mxu0 %vm38_vm1, %v30_v4  ;;  %p183_p8 = por %p182_p7, %p181_p6 }
  0x16   :  { %p184_p9 = pnand %p183_p8, %p177_p5 }
  0x17   :  { %146 = vmatmul.mubr.msk.f32.vlgmr.msra.gmra.mxu0 %vm38_vm1, %v29_v5 }
  0x8c   :  { %v36_v6 = vpop.permute.xlu0 %35 }
  0xd7   :  { %v114_v7 = vpop.f32.mrf.mxu0 }
  0xd8   :  { %v115_v8 = vadd.f32 %v114_v7, %v36_v6 }
  0xd9   :  { %v147_v9 = vpop.f32.mrf.mxu0 }
  0xda   :  { %119 = vst.msk [vmem:[#allocation5] sm:$0xff] %vm118_vm2, %v115_v8 }
  0xdb   :  { %187 = shalt.err (!%p184_p9)
}
  0xdc   :  { %129 = dma.vmem_to_hbm [thread:$0]  %s127_s23, 128, %s242_s3, [#allocation4]  }
  0xdd   :  { %198 = dma.done.wait [#allocation4], 128  }
  0xde   :  { %199 = vsyncadd [#allocation4], 4294967168 }
  0xdf   :  { %133 = vsyncpa [#allocation3], 1 }
  0xe0   :  { %134 = vsyncpa [#allocation4], 1 }

</bundles_post_ra>
